<compile_context>
chip_gen: v7x
topology: tpu7x:2x2x1
jax: 0.10.0
libtpu: 0.0.40
codegen_flags: <defaults>
</compile_context>

<pallas_src>
import jax
import jax.numpy as jnp
from jax.experimental import pallas as pl
from jax.experimental.pallas import tpu as pltpu


_LANE = 128
_TARGET_BLOCK_BYTES = 4 * 1024 * 1024    # ~4 MiB data tile (good on v5e/v6e/v7x)
_VMEM_LIMIT_BYTES = 48 * 1024 * 1024     # > default scoped limit, < v7x 64 MiB physical


def _prelu_kernel(w_ref, x_ref, o_ref):
    # w_ref: (TR, 1) per-row slope  OR  (1, TL) per-column slope — broadcasts.
    # x_ref / o_ref: (TR, TL) data tiles.
    x = x_ref[...]
    w = w_ref[...]
    o_ref[...] = jnp.where(x >= 0, x, w * x)


def _sublane_multiple(itemsize: int) -> int:
    # Sub-32-bit dtypes pack along sublanes: keep tiles fully packed.
    return {1: 32, 2: 16}.get(itemsize, 8)


def _pick_tiles(R, L, itemsize):
    """Pick (TR, TL) for a (R, L) streaming pass with cdiv (ragged) grids."""
    sub = _sublane_multiple(itemsize)

    # Lane (last) dim: fixed lane-dense multiple of 128, ragged last block.
    if L < _LANE:
        TL = L                                        # tiny: full extent (legal)
    else:
        TL = min(2048, pl.cdiv(L, _LANE) * _LANE)

    # Row (sublane) dim: dtype-aware alignment, ~_TARGET_BLOCK_BYTES per block.
    if R < sub:
        TR = R                                        # tiny: full extent (legal)
    else:
        target_rows = max(sub, _TARGET_BLOCK_BYTES // (TL * itemsize))
        TR = min((target_rows // sub) * sub, pl.cdiv(R, sub) * sub)
        TR = max(TR, sub)

    # v7x: 2 TensorCores are sharded over "parallel" grid axes — make sure at
    # least two blocks exist whenever the tensor is big enough to matter.
    total_bytes = R * L * itemsize
    n_blocks = pl.cdiv(R, TR) * pl.cdiv(L, TL)
    if total_bytes > _TARGET_BLOCK_BYTES and n_blocks < 2:
        if R >= 2 * sub:
            TR = max(sub, pl.cdiv(pl.cdiv(R, 2), sub) * sub)
        elif L >= 2 * _LANE:
            TL = max(_LANE, pl.cdiv(pl.cdiv(L, 2), _LANE) * _LANE)

    return TR, TL


def prelu_pallas(x_nchw: jax.Array, weight: jax.Array) -> jax.Array:
    """x_nchw: (N, C, H, W); weight: (C,) per-channel slopes or (1,) shared."""
    N, C, H, W = x_nchw.shape
    dtype = x_nchw.dtype
    itemsize = jnp.dtype(dtype).itemsize

    if weight.shape == (1,):
        weight = jnp.broadcast_to(weight, (C,))
    assert weight.shape == (C,), "PReLU weight must be (C,) or (1,)"
    weight = weight.astype(dtype)

    if H * W >= _LANE:
        # Lane-dense spatial: free reshape (N,C,H,W) -> (N*C, H*W), slope per row.
        R, L = N * C, H * W
        x2 = x_nchw.reshape(R, L)
        slope = jnp.tile(weight, N).reshape(R, 1)

        def slope_spec(TR, TL):
            return pl.BlockSpec((TR, 1), lambda i, j: (i, 0))
    else:
        # Small-spatial: free reshape (N,C,H,W) -> (N, C*H*W) keeps rows
        # lane-dense; slope becomes a per-column row built once.
        R, L = N, C * H * W
        x2 = x_nchw.reshape(R, L)
        slope = jnp.repeat(weight, H * W).reshape(1, L)

        def slope_spec(TR, TL):
            return pl.BlockSpec((1, TL), lambda i, j: (0, j))

    TR, TL = _pick_tiles(R, L, itemsize)
    grid = (pl.cdiv(R, TR), pl.cdiv(L, TL))   # ragged trailing blocks are masked

    out2 = pl.pallas_call(
        _prelu_kernel,
        out_shape=jax.ShapeDtypeStruct((R, L), dtype),
        grid=grid,
        in_specs=[
            slope_spec(TR, TL),                            # tiny slope tile
            pl.BlockSpec((TR, TL), lambda i, j: (i, j)),   # data tile
        ],
        out_specs=pl.BlockSpec((TR, TL), lambda i, j: (i, j)),
        compiler_params=pltpu.CompilerParams(
            dimension_semantics=("parallel", "parallel"),
            vmem_limit_bytes=_VMEM_LIMIT_BYTES,
        ),
    )(slope, x2)

    # Free reshape back (splits dims — no copy).
    return out2.reshape(N, C, H, W)


if __name__ == "__main__":
    num_params = 3  # matches FPReLUTest(num_params=3); must equal channel dim

    key = jax.random.PRNGKey(0)
    kx, kw = jax.random.split(key)

    # Small NCHW input: batch=2, channels=num_params=3, spatial=16x16.
    x = jax.random.normal(kx, (2, num_params, 16, 16), dtype=jnp.float32)
    # torch.rand -> uniform [0, 1); deterministic in-script init.
    # TODO(synk): the PyTorch module re-draws random weights on every forward;
    # here the weight is drawn once in-script.
    weight = jax.random.uniform(kw, (num_params,), dtype=jnp.float32)

    out = prelu_pallas(x, weight)
    out = jax.block_until_ready(out)

    # Reference: F.prelu semantics in plain JAX.
    ref = jnp.where(x >= 0, x, weight[None, :, None, None] * x)
    assert out.shape == x.shape and out.dtype == x.dtype
    assert jnp.allclose(out, ref, atol=1e-6, rtol=1e-6)

    print("KERNEL_OK")
</pallas_src>

<mosaic_0001>
module attributes {stable_mosaic.version = 11 : i64} {
  func.func @_prelu_kernel(%arg0: i32, %arg1: i32, %arg2: memref<6x1xf32, #tpu.memory_space<vmem>>, %arg3: memref<6x256xf32, #tpu.memory_space<vmem>>, %arg4: memref<6x256xf32, #tpu.memory_space<vmem>>) attributes {dimension_semantics = [#tpu.dimension_semantics<parallel>, #tpu.dimension_semantics<parallel>], iteration_bounds = array<i64: 1, 1>, scalar_prefetch = 0 : i64, scratch_operands = 0 : i64, tpu.core_type = #tpu.core_type<tc>, window_params = [{transform_indices = @transform_0, window_bounds = array<i64: 6, 1>}, {transform_indices = @transform_1, window_bounds = array<i64: 6, 256>}, {transform_indices = @transform_2, window_bounds = array<i64: 6, 256>}]} {
    %c0 = arith.constant 0 : index
    %c0_0 = arith.constant 0 : index
    %0 = vector.load %arg3[%c0, %c0_0] : memref<6x256xf32, #tpu.memory_space<vmem>>, vector<6x256xf32>
    %c0_1 = arith.constant 0 : index
    %c0_2 = arith.constant 0 : index
    %1 = vector.load %arg2[%c0_1, %c0_2] : memref<6x1xf32, #tpu.memory_space<vmem>>, vector<6x1xf32>
    %cst = arith.constant 0.000000e+00 : f32
    %2 = vector.broadcast %cst : f32 to vector<6x256xf32>
    %3 = arith.cmpf oge, %0, %2 : vector<6x256xf32>
    %4 = vector.broadcast %1 : vector<6x1xf32> to vector<6x256xf32>
    %5 = arith.mulf %4, %0 : vector<6x256xf32>
    %6 = arith.select %3, %0, %5 : vector<6x256xi1>, vector<6x256xf32>
    %c0_3 = arith.constant 0 : index
    %c0_4 = arith.constant 0 : index
    %7 = vector.load %arg4[%c0_3, %c0_4] : memref<6x256xf32, #tpu.memory_space<vmem>>, vector<6x256xf32>
    tpu.vector_store %arg4[%c0_3, %c0_4], %6 {strides = array<i32>} : memref<6x256xf32, #tpu.memory_space<vmem>>, vector<6x256xf32>,
    return
  }
  func.func @transform_0(%arg0: i32, %arg1: i32) -> (i32, i32) {
    %c0_i32 = arith.constant 0 : i32
    %c0_i32_0 = arith.constant 0 : i32
    return %arg0, %c0_i32 : i32, i32
  }
  func.func @transform_1(%arg0: i32, %arg1: i32) -> (i32, i32) {
    %c0_i32 = arith.constant 0 : i32
    return %arg0, %arg1 : i32, i32
  }
  func.func @transform_2(%arg0: i32, %arg1: i32) -> (i32, i32) {
    %c0_i32 = arith.constant 0 : i32
    return %arg0, %arg1 : i32, i32
  }
}

</mosaic_0001>

<bundles_post_ra>
// kernel: tpu_custom_call.1
= control target key start
LH: loop header
LB: loop body
LE: loop exit
PB: predicated region body
PF: predicated region fallthrough
CT: control target
= control target key end

     0   :  { %7 = vsyncpa [#allocation3], 0  ;;  %s152_s0 = inlined_call_operand.vmem [shape: f32[6,1], index: 0, kind: input, shape index: {}]   ;;  %s153_s1 = inlined_call_operand.hbm [shape: f32[6,256], index: 1, kind: input, shape index: {}]   ;;  %s154_s2 = inlined_call_operand.hbm [shape: f32[6,256], index: 2, kind: output, shape index: {}]  }
   0x1   :  { %8 = vsyncpa [#allocation4], 0  ;;  %s107_s9 = smov [#allocation2]   ;;  %s59_s13 = scalar_lea.hbm %s153_s1, 256 }
   0x2   :  { %s17_s10 = sshll.u32 %s107_s9, 4  ;;  %p60_p0 = scmp.ne.s32.totalorder %s153_s1, %s59_s13  ;;  %s18_s10 = int_to_ptr.vmem [resolvable:$true] %s17_s10 }
   0x3   :  { %p63_p1 = scmp.lt.u32.totalorder %s59_s13, %s153_s1 }
   0x5   :  { %p65_p2 = pnand %p63_p1, %p60_p0 }
   0x7   :  { %68 = shalt.err (!%p65_p2)
}
   0x8   :  { %s69_s18 = scalar_lea.vmem %s18_s10, 256  ;;  %p74_p4 = scmp.lt.s32.totalorder %s18_s10, %s18_s10 }
   0x9   :  { %p70_p3 = scmp.ne.s32.totalorder %s18_s10, %s69_s18  ;;  %p75_p5 = scmp.lt.s32.totalorder %s69_s18, %s69_s18 }
   0xb   :  { %p76_p6 = por %p75_p5, %p74_p4 }
   0xd   :  { %p77_p7 = pnand %p76_p6, %p70_p3 }
   0xf   :  { %80 = shalt.err (!%p77_p7)
}
  0x10   :  { %20 = dma.hbm_to_vmem [thread:$0]  %s153_s1, 256, %s18_s10, [#allocation3]  }
  0x11   :  { %103 = dma.done.wait [#allocation3], 256  }
  0x12   :  { %104 = vsyncadd [#allocation3], 4294967040  ;;  %v108_v0 = vmov 0   ;;  %v26_v1 = vld [vmem:[%s152_s0] sm:$0x3f]  ;;  %s109_s23 = smov [#allocation5]  }
  0x13   :  { %58 = vset.pattern.permute.xlu0 %v108_v0  ;;  %v24_v2 = vld [vmem:[#allocation2] sm:$0x3f]  ;;  %v25_v3 = vld [vmem:[#allocation2 + $0x8] sm:$0x3f]  ;;  %s46_s24 = sshll.u32 %s109_s23, 4  ;;  %s47_s24 = int_to_ptr.vmem [resolvable:$true] %s46_s24 }
  0x14   :  { %31 = vperm.xlu0 %58, %v26_v1   ;;  %vm27_vm0 = vcmp.ge.f32.partialorder %v24_v2, 0.0  ;;  %vm28_vm1 = vcmp.ge.f32.partialorder %v25_v3, 0.0  ;;  %s81_s1 = scalar_lea.vmem %s47_s24, 256  ;;  %p86_p9 = scmp.lt.s32.totalorder %s47_s24, %s47_s24 }
  0x15   :  { %p82_p8 = scmp.ne.s32.totalorder %s47_s24, %s81_s1  ;;  %p87_p10 = scmp.lt.s32.totalorder %s81_s1, %s81_s1 }
  0x17   :  { %p88_p11 = por %p87_p10, %p86_p9 }
  0x19   :  { %p89_p12 = pnand %p88_p11, %p82_p8 }
  0x93   :  { %v32_v4 = vpop.permute.xlu0 %31 }
  0x94   :  { %v34_v5 = vmul.f32 %v32_v4, %v24_v2  ;;  %v35_v6 = vmul.f32 %v32_v4, %v25_v3 }
  0x96   :  { %v36_v7 = vsel %vm27_vm0, %v24_v2, %v34_v5  ;;  %v37_v8 = vsel %vm28_vm1, %v25_v3, %v35_v6 }
  0x97   :  { %38 = vst [vmem:[#allocation5] sm:$0x3f] %v36_v7  ;;  %39 = vst [vmem:[#allocation5 + $0x8] sm:$0x3f] %v37_v8 }
  0x98   :  { %92 = shalt.err (!%p89_p12)
}
  0x99   :  { %s93_s26 = scalar_lea.hbm %s154_s2, 256 }
  0x9a   :  { %p94_p13 = scmp.ne.s32.totalorder %s154_s2, %s93_s26  ;;  %p97_p0 = scmp.lt.u32.totalorder %s93_s26, %s154_s2 }
  0x9c   :  { %p99_p1 = pnand %p97_p0, %p94_p13 }
  0x9e   :  { %102 = shalt.err (!%p99_p1)
}
  0x9f   :  { %49 = dma.vmem_to_hbm [thread:$0]  %s47_s24, 256, %s154_s2, [#allocation4]  }
  0xa0   :  { %105 = dma.done.wait [#allocation4], 256  }
  0xa1   :  { %106 = vsyncadd [#allocation4], 4294967040 }
  0xa2   :  { %53 = vsyncpa [#allocation3], 1 }
  0xa3   :  { %54 = vsyncpa [#allocation4], 1 }

</bundles_post_ra>
